<compile_context>
chip_gen: v5e
topology: v5e:2x2
jax: 0.10.0
libtpu: 0.0.40
codegen_flags: <defaults>
</compile_context>

<pallas_src>
import jax
import jax.numpy as jnp
from jax.experimental import pallas as pl
from jax.experimental.pallas import tpu as pltpu


def make_mlp_kernel(in_features: int, hidden: int):
    """Kernel specialized (trace-time unrolled) on the static layer sizes."""
    w1_off = 0                              # w1[k, j] at k*hidden + j
    b1_off = in_features * hidden           # b1[j]
    w2_off = b1_off + hidden                # w2[j]
    b2_off = w2_off + hidden                # b2 scalar

    def mlp_kernel(p_ref, x_ref, o_ref):
        # p_ref: (in*H + 2H + 1,) f32 in SMEM -- scalar reads, VPU splats.
        # x_ref: (in, TB) f32 in VMEM       -- batch on the lane axis.
        # o_ref: (1, TB) f32                -- lane-dense output tile.
        x = x_ref[...]
        tb = x.shape[1]

        # y accumulates b2 + sum_j w2[j] * relu(b1[j] + sum_k w1[k,j] * x[k, :]).
        y = jnp.full((1, tb), p_ref[b2_off], dtype=jnp.float32)
        for j in range(hidden):                               # static, unrolled (H == 10)
            h = x[0:1, :] * p_ref[w1_off + j]                 # w1[0, j]
            for k in range(1, in_features):                   # static, unrolled (in == 3)
                h = h + x[k:k + 1, :] * p_ref[w1_off + k * hidden + j]
            h = h + p_ref[b1_off + j]                         # + b1[j]
            h = jnp.maximum(h, 0.0)                           # ReLU
            y = y + h * p_ref[w2_off + j]                     # + w2[j] * h_j

        o_ref[...] = y.astype(o_ref.dtype)

    return mlp_kernel


def simple_nn_forward(x, w1, b1, w2, b2, *, block_b=None):
    """Pallas forward pass of SimpleNN.

    x:  (B, input_size)
    w1: (input_size, hidden_size)   b1: (1, hidden_size)
    w2: (hidden_size, output_size)  b2: (1, output_size)
    returns: (B, output_size) float32
    """
    B, in_features = x.shape
    hidden = w1.shape[1]
    out_features = w2.shape[1]
    # Layer 2 is implemented as scalar-FMA row accumulation; spec fixes output_size=1.
    assert out_features == 1, "kernel specialized for output_size == 1 (per SimpleNN spec)"

    # Flat 1-D f32 parameter vector -> SMEM (1-D deliberately: a 2-D SMEM tile
    # would pad to [8, 128] words; 1-D pads to a few hundred bytes).
    params = jnp.concatenate(
        [w1.reshape(-1), b1.reshape(-1), w2.reshape(-1), b2.reshape(-1)]
    ).astype(jnp.float32)

    # Batch on the lane axis: wrapper-side layout plumbing only.
    x_t = x.T.astype(jnp.float32)                         # (in, B)

    # Per-grid-step overhead (~0.35 us) dominates this mem-light kernel: use the
    # biggest lane-dense tile available.  VMEM is never the constraint here
    # (even v7x's 64 MiB).  Only tile when B is a large multiple of 8192, which
    # also gives >=2 grid steps for v7x's two TensorCores.
    if block_b is None:
        block_b = 8192 if (B > 8192 and B % 8192 == 0) else B
    assert B % block_b == 0, "batch must be divisible by the batch tile"
    grid = (B // block_b,)

    flops = 2 * B * (in_features * hidden + hidden * out_features)
    bytes_accessed = (x_t.size + params.size + B * out_features) * 4

    out_t = pl.pallas_call(
        make_mlp_kernel(in_features, hidden),
        out_shape=jax.ShapeDtypeStruct((out_features, B), jnp.float32),
        grid=grid,
        in_specs=[
            # Params: whole array in SMEM, resident across all grid steps.
            pl.BlockSpec(memory_space=pltpu.MemorySpace.SMEM),
            # x: (in, block_b) lane-dense batch tiles.
            pl.BlockSpec((in_features, block_b), lambda i: (0, i)),
        ],
        out_specs=pl.BlockSpec((out_features, block_b), lambda i: (0, i)),
        compiler_params=pltpu.CompilerParams(dimension_semantics=("parallel",)),
        cost_estimate=pl.CostEstimate(
            flops=flops, transcendentals=0, bytes_accessed=bytes_accessed),
    )(params, x_t)

    return out_t.T                                        # (B, out_features)


def reference_forward(x, w1, b1, w2, b2):
    h = jnp.maximum(x @ w1 + b1, 0.0)
    return h @ w2 + b2


if __name__ == "__main__":
    input_size, hidden_size, output_size = 3, 10, 1
    batch = 8

    key = jax.random.PRNGKey(0)
    kx, kw1, kb1, kw2, kb2 = jax.random.split(key, 5)

    # Deterministic synthetic parameters (nn.Linear math as x @ W + b with W stored (in, out)).
    x = jax.random.normal(kx, (batch, input_size), dtype=jnp.float32)
    w1 = jax.random.normal(kw1, (input_size, hidden_size), dtype=jnp.float32) * 0.1
    b1 = jax.random.normal(kb1, (1, hidden_size), dtype=jnp.float32) * 0.1
    w2 = jax.random.normal(kw2, (hidden_size, output_size), dtype=jnp.float32) * 0.1
    b2 = jax.random.normal(kb2, (1, output_size), dtype=jnp.float32) * 0.1

    # Shape prints mirror the PyTorch module's forward (host-side; not in-kernel).
    print("\nForward Pass Shapes:")
    print("Input Shape:", x.shape)

    out = simple_nn_forward(x, w1, b1, w2, b2)
    out = jax.block_until_ready(out)

    print("After Layer 1 (Linear) Shape:", (batch, hidden_size))
    print("After ReLU Activation Shape:", (batch, hidden_size))
    print("After Layer 2 (Linear) Shape:", out.shape)

    ref = reference_forward(x, w1, b1, w2, b2)
    assert out.shape == (batch, output_size)
    assert jnp.allclose(out, ref, atol=1e-5, rtol=1e-5), "mismatch vs reference"

    print("KERNEL_OK")
</pallas_src>

<mosaic_0001>
module attributes {stable_mosaic.version = 11 : i64} {
  func.func @mlp_kernel(%arg0: i32, %arg1: memref<51xf32, #tpu.memory_space<smem>>, %arg2: memref<3x8xf32, #tpu.memory_space<vmem>>, %arg3: memref<1x8xf32, #tpu.memory_space<vmem>>) attributes {dimension_semantics = [#tpu.dimension_semantics<parallel>], iteration_bounds = array<i64: 1>, scalar_prefetch = 0 : i64, scratch_operands = 0 : i64, tpu.core_type = #tpu.core_type<tc>, window_params = [{transform_indices = @transform_0, window_bounds = array<i64: 51>}, {transform_indices = @transform_1, window_bounds = array<i64: 3, 8>}, {transform_indices = @transform_2, window_bounds = array<i64: 1, 8>}]} {
    %c0 = arith.constant 0 : index
    %c0_0 = arith.constant 0 : index
    %0 = vector.load %arg2[%c0, %c0_0] : memref<3x8xf32, #tpu.memory_space<vmem>>, vector<3x8xf32>
    %c50 = arith.constant 50 : index
    %1 = memref.load %arg1[%c50] : memref<51xf32, #tpu.memory_space<smem>>
    %2 = vector.broadcast %1 : f32 to vector<1x8xf32>
    %3 = vector.extract_strided_slice %0 {offsets = [0, 0], sizes = [1, 8], strides = [1, 1]} : vector<3x8xf32> to vector<1x8xf32>
    %c0_1 = arith.constant 0 : index
    %4 = memref.load %arg1[%c0_1] : memref<51xf32, #tpu.memory_space<smem>>
    %5 = vector.broadcast %4 : f32 to vector<1x8xf32>
    %6 = arith.mulf %3, %5 : vector<1x8xf32>
    %7 = vector.extract_strided_slice %0 {offsets = [1, 0], sizes = [1, 8], strides = [1, 1]} : vector<3x8xf32> to vector<1x8xf32>
    %c10 = arith.constant 10 : index
    %8 = memref.load %arg1[%c10] : memref<51xf32, #tpu.memory_space<smem>>
    %9 = vector.broadcast %8 : f32 to vector<1x8xf32>
    %10 = arith.mulf %7, %9 : vector<1x8xf32>
    %11 = arith.addf %6, %10 : vector<1x8xf32>
    %12 = vector.extract_strided_slice %0 {offsets = [2, 0], sizes = [1, 8], strides = [1, 1]} : vector<3x8xf32> to vector<1x8xf32>
    %c20 = arith.constant 20 : index
    %13 = memref.load %arg1[%c20] : memref<51xf32, #tpu.memory_space<smem>>
    %14 = vector.broadcast %13 : f32 to vector<1x8xf32>
    %15 = arith.mulf %12, %14 : vector<1x8xf32>
    %16 = arith.addf %11, %15 : vector<1x8xf32>
    %c30 = arith.constant 30 : index
    %17 = memref.load %arg1[%c30] : memref<51xf32, #tpu.memory_space<smem>>
    %18 = vector.broadcast %17 : f32 to vector<1x8xf32>
    %19 = arith.addf %16, %18 : vector<1x8xf32>
    %cst = arith.constant 0.000000e+00 : f32
    %20 = vector.broadcast %cst : f32 to vector<1x8xf32>
    %21 = arith.maximumf %19, %20 : vector<1x8xf32>
    %c40 = arith.constant 40 : index
    %22 = memref.load %arg1[%c40] : memref<51xf32, #tpu.memory_space<smem>>
    %23 = vector.broadcast %22 : f32 to vector<1x8xf32>
    %24 = arith.mulf %21, %23 : vector<1x8xf32>
    %25 = arith.addf %2, %24 : vector<1x8xf32>
    %26 = vector.extract_strided_slice %0 {offsets = [0, 0], sizes = [1, 8], strides = [1, 1]} : vector<3x8xf32> to vector<1x8xf32>
    %c1 = arith.constant 1 : index
    %27 = memref.load %arg1[%c1] : memref<51xf32, #tpu.memory_space<smem>>
    %28 = vector.broadcast %27 : f32 to vector<1x8xf32>
    %29 = arith.mulf %26, %28 : vector<1x8xf32>
    %30 = vector.extract_strided_slice %0 {offsets = [1, 0], sizes = [1, 8], strides = [1, 1]} : vector<3x8xf32> to vector<1x8xf32>
    %c11 = arith.constant 11 : index
    %31 = memref.load %arg1[%c11] : memref<51xf32, #tpu.memory_space<smem>>
    %32 = vector.broadcast %31 : f32 to vector<1x8xf32>
    %33 = arith.mulf %30, %32 : vector<1x8xf32>
    %34 = arith.addf %29, %33 : vector<1x8xf32>
    %35 = vector.extract_strided_slice %0 {offsets = [2, 0], sizes = [1, 8], strides = [1, 1]} : vector<3x8xf32> to vector<1x8xf32>
    %c21 = arith.constant 21 : index
    %36 = memref.load %arg1[%c21] : memref<51xf32, #tpu.memory_space<smem>>
    %37 = vector.broadcast %36 : f32 to vector<1x8xf32>
    %38 = arith.mulf %35, %37 : vector<1x8xf32>
    %39 = arith.addf %34, %38 : vector<1x8xf32>
    %c31 = arith.constant 31 : index
    %40 = memref.load %arg1[%c31] : memref<51xf32, #tpu.memory_space<smem>>
    %41 = vector.broadcast %40 : f32 to vector<1x8xf32>
    %42 = arith.addf %39, %41 : vector<1x8xf32>
    %cst_2 = arith.constant 0.000000e+00 : f32
    %43 = vector.broadcast %cst_2 : f32 to vector<1x8xf32>
    %44 = arith.maximumf %42, %43 : vector<1x8xf32>
    %c41 = arith.constant 41 : index
    %45 = memref.load %arg1[%c41] : memref<51xf32, #tpu.memory_space<smem>>
    %46 = vector.broadcast %45 : f32 to vector<1x8xf32>
    %47 = arith.mulf %44, %46 : vector<1x8xf32>
    %48 = arith.addf %25, %47 : vector<1x8xf32>
    %49 = vector.extract_strided_slice %0 {offsets = [0, 0], sizes = [1, 8], strides = [1, 1]} : vector<3x8xf32> to vector<1x8xf32>
    %c2 = arith.constant 2 : index
    %50 = memref.load %arg1[%c2] : memref<51xf32, #tpu.memory_space<smem>>
    %51 = vector.broadcast %50 : f32 to vector<1x8xf32>
    %52 = arith.mulf %49, %51 : vector<1x8xf32>
    %53 = vector.extract_strided_slice %0 {offsets = [1, 0], sizes = [1, 8], strides = [1, 1]} : vector<3x8xf32> to vector<1x8xf32>
    %c12 = arith.constant 12 : index
    %54 = memref.load %arg1[%c12] : memref<51xf32, #tpu.memory_space<smem>>
    %55 = vector.broadcast %54 : f32 to vector<1x8xf32>
    %56 = arith.mulf %53, %55 : vector<1x8xf32>
    %57 = arith.addf %52, %56 : vector<1x8xf32>
    %58 = vector.extract_strided_slice %0 {offsets = [2, 0], sizes = [1, 8], strides = [1, 1]} : vector<3x8xf32> to vector<1x8xf32>
    %c22 = arith.constant 22 : index
    %59 = memref.load %arg1[%c22] : memref<51xf32, #tpu.memory_space<smem>>
    %60 = vector.broadcast %59 : f32 to vector<1x8xf32>
    %61 = arith.mulf %58, %60 : vector<1x8xf32>
    %62 = arith.addf %57, %61 : vector<1x8xf32>
    %c32 = arith.constant 32 : index
    %63 = memref.load %arg1[%c32] : memref<51xf32, #tpu.memory_space<smem>>
    %64 = vector.broadcast %63 : f32 to vector<1x8xf32>
    %65 = arith.addf %62, %64 : vector<1x8xf32>
    %cst_3 = arith.constant 0.000000e+00 : f32
    %66 = vector.broadcast %cst_3 : f32 to vector<1x8xf32>
    %67 = arith.maximumf %65, %66 : vector<1x8xf32>
    %c42 = arith.constant 42 : index
    %68 = memref.load %arg1[%c42] : memref<51xf32, #tpu.memory_space<smem>>
    %69 = vector.broadcast %68 : f32 to vector<1x8xf32>
    %70 = arith.mulf %67, %69 : vector<1x8xf32>
    %71 = arith.addf %48, %70 : vector<1x8xf32>
    %72 = vector.extract_strided_slice %0 {offsets = [0, 0], sizes = [1, 8], strides = [1, 1]} : vector<3x8xf32> to vector<1x8xf32>
    %c3 = arith.constant 3 : index
    %73 = memref.load %arg1[%c3] : memref<51xf32, #tpu.memory_space<smem>>
    %74 = vector.broadcast %73 : f32 to vector<1x8xf32>
    %75 = arith.mulf %72, %74 : vector<1x8xf32>
    %76 = vector.extract_strided_slice %0 {offsets = [1, 0], sizes = [1, 8], strides = [1, 1]} : vector<3x8xf32> to vector<1x8xf32>
    %c13 = arith.constant 13 : index
    %77 = memref.load %arg1[%c13] : memref<51xf32, #tpu.memory_space<smem>>
    %78 = vector.broadcast %77 : f32 to vector<1x8xf32>
    %79 = arith.mulf %76, %78 : vector<1x8xf32>
    %80 = arith.addf %75, %79 : vector<1x8xf32>
    %81 = vector.extract_strided_slice %0 {offsets = [2, 0], sizes = [1, 8], strides = [1, 1]} : vector<3x8xf32> to vector<1x8xf32>
    %c23 = arith.constant 23 : index
    %82 = memref.load %arg1[%c23] : memref<51xf32, #tpu.memory_space<smem>>
    %83 = vector.broadcast %82 : f32 to vector<1x8xf32>
    %84 = arith.mulf %81, %83 : vector<1x8xf32>
    %85 = arith.addf %80, %84 : vector<1x8xf32>
    %c33 = arith.constant 33 : index
    %86 = memref.load %arg1[%c33] : memref<51xf32, #tpu.memory_space<smem>>
    %87 = vector.broadcast %86 : f32 to vector<1x8xf32>
    %88 = arith.addf %85, %87 : vector<1x8xf32>
    %cst_4 = arith.constant 0.000000e+00 : f32
    %89 = vector.broadcast %cst_4 : f32 to vector<1x8xf32>
    %90 = arith.maximumf %88, %89 : vector<1x8xf32>
    %c43 = arith.constant 43 : index
    %91 = memref.load %arg1[%c43] : memref<51xf32, #tpu.memory_space<smem>>
    %92 = vector.broadcast %91 : f32 to vector<1x8xf32>
    %93 = arith.mulf %90, %92 : vector<1x8xf32>
    %94 = arith.addf %71, %93 : vector<1x8xf32>
    %95 = vector.extract_strided_slice %0 {offsets = [0, 0], sizes = [1, 8], strides = [1, 1]} : vector<3x8xf32> to vector<1x8xf32>
    %c4 = arith.constant 4 : index
    %96 = memref.load %arg1[%c4] : memref<51xf32, #tpu.memory_space<smem>>
    %97 = vector.broadcast %96 : f32 to vector<1x8xf32>
    %98 = arith.mulf %95, %97 : vector<1x8xf32>
    %99 = vector.extract_strided_slice %0 {offsets = [1, 0], sizes = [1, 8], strides = [1, 1]} : vector<3x8xf32> to vector<1x8xf32>
    %c14 = arith.constant 14 : index
    %100 = memref.load %arg1[%c14] : memref<51xf32, #tpu.memory_space<smem>>
    %101 = vector.broadcast %100 : f32 to vector<1x8xf32>
    %102 = arith.mulf %99, %101 : vector<1x8xf32>
    %103 = arith.addf %98, %102 : vector<1x8xf32>
    %104 = vector.extract_strided_slice %0 {offsets = [2, 0], sizes = [1, 8], strides = [1, 1]} : vector<3x8xf32> to vector<1x8xf32>
    %c24 = arith.constant 24 : index
    %105 = memref.load %arg1[%c24] : memref<51xf32, #tpu.memory_space<smem>>
    %106 = vector.broadcast %105 : f32 to vector<1x8xf32>
    %107 = arith.mulf %104, %106 : vector<1x8xf32>
    %108 = arith.addf %103, %107 : vector<1x8xf32>
    %c34 = arith.constant 34 : index
    %109 = memref.load %arg1[%c34] : memref<51xf32, #tpu.memory_space<smem>>
    %110 = vector.broadcast %109 : f32 to vector<1x8xf32>
    %111 = arith.addf %108, %110 : vector<1x8xf32>
    %cst_5 = arith.constant 0.000000e+00 : f32
    %112 = vector.broadcast %cst_5 : f32 to vector<1x8xf32>
    %113 = arith.maximumf %111, %112 : vector<1x8xf32>
    %c44 = arith.constant 44 : index
    %114 = memref.load %arg1[%c44] : memref<51xf32, #tpu.memory_space<smem>>
    %115 = vector.broadcast %114 : f32 to vector<1x8xf32>
    %116 = arith.mulf %113, %115 : vector<1x8xf32>
    %117 = arith.addf %94, %116 : vector<1x8xf32>
    %118 = vector.extract_strided_slice %0 {offsets = [0, 0], sizes = [1, 8], strides = [1, 1]} : vector<3x8xf32> to vector<1x8xf32>
    %c5 = arith.constant 5 : index
    %119 = memref.load %arg1[%c5] : memref<51xf32, #tpu.memory_space<smem>>
    %120 = vector.broadcast %119 : f32 to vector<1x8xf32>
    %121 = arith.mulf %118, %120 : vector<1x8xf32>
    %122 = vector.extract_strided_slice %0 {offsets = [1, 0], sizes = [1, 8], strides = [1, 1]} : vector<3x8xf32> to vector<1x8xf32>
    %c15 = arith.constant 15 : index
    %123 = memref.load %arg1[%c15] : memref<51xf32, #tpu.memory_space<smem>>
    %124 = vector.broadcast %123 : f32 to vector<1x8xf32>
    %125 = arith.mulf %122, %124 : vector<1x8xf32>
    %126 = arith.addf %121, %125 : vector<1x8xf32>
    %127 = vector.extract_strided_slice %0 {offsets = [2, 0], sizes = [1, 8], strides = [1, 1]} : vector<3x8xf32> to vector<1x8xf32>
    %c25 = arith.constant 25 : index
    %128 = memref.load %arg1[%c25] : memref<51xf32, #tpu.memory_space<smem>>
    %129 = vector.broadcast %128 : f32 to vector<1x8xf32>
    %130 = arith.mulf %127, %129 : vector<1x8xf32>
    %131 = arith.addf %126, %130 : vector<1x8xf32>
    %c35 = arith.constant 35 : index
    %132 = memref.load %arg1[%c35] : memref<51xf32, #tpu.memory_space<smem>>
    %133 = vector.broadcast %132 : f32 to vector<1x8xf32>
    %134 = arith.addf %131, %133 : vector<1x8xf32>
    %cst_6 = arith.constant 0.000000e+00 : f32
    %135 = vector.broadcast %cst_6 : f32 to vector<1x8xf32>
    %136 = arith.maximumf %134, %135 : vector<1x8xf32>
    %c45 = arith.constant 45 : index
    %137 = memref.load %arg1[%c45] : memref<51xf32, #tpu.memory_space<smem>>
    %138 = vector.broadcast %137 : f32 to vector<1x8xf32>
    %139 = arith.mulf %136, %138 : vector<1x8xf32>
    %140 = arith.addf %117, %139 : vector<1x8xf32>
    %141 = vector.extract_strided_slice %0 {offsets = [0, 0], sizes = [1, 8], strides = [1, 1]} : vector<3x8xf32> to vector<1x8xf32>
    %c6 = arith.constant 6 : index
    %142 = memref.load %arg1[%c6] : memref<51xf32, #tpu.memory_space<smem>>
    %143 = vector.broadcast %142 : f32 to vector<1x8xf32>
    %144 = arith.mulf %141, %143 : vector<1x8xf32>
    %145 = vector.extract_strided_slice %0 {offsets = [1, 0], sizes = [1, 8], strides = [1, 1]} : vector<3x8xf32> to vector<1x8xf32>
    %c16 = arith.constant 16 : index
    %146 = memref.load %arg1[%c16] : memref<51xf32, #tpu.memory_space<smem>>
    %147 = vector.broadcast %146 : f32 to vector<1x8xf32>
    %148 = arith.mulf %145, %147 : vector<1x8xf32>
    %149 = arith.addf %144, %148 : vector<1x8xf32>
    %150 = vector.extract_strided_slice %0 {offsets = [2, 0], sizes = [1, 8], strides = [1, 1]} : vector<3x8xf32> to vector<1x8xf32>
    %c26 = arith.constant 26 : index
    %151 = memref.load %arg1[%c26] : memref<51xf32, #tpu.memory_space<smem>>
    %152 = vector.broadcast %151 : f32 to vector<1x8xf32>
    %153 = arith.mulf %150, %152 : vector<1x8xf32>
    %154 = arith.addf %149, %153 : vector<1x8xf32>
    %c36 = arith.constant 36 : index
    %155 = memref.load %arg1[%c36] : memref<51xf32, #tpu.memory_space<smem>>
    %156 = vector.broadcast %155 : f32 to vector<1x8xf32>
    %157 = arith.addf %154, %156 : vector<1x8xf32>
    %cst_7 = arith.constant 0.000000e+00 : f32
    %158 = vector.broadcast %cst_7 : f32 to vector<1x8xf32>
    %159 = arith.maximumf %157, %158 : vector<1x8xf32>
    %c46 = arith.constant 46 : index
    %160 = memref.load %arg1[%c46] : memref<51xf32, #tpu.memory_space<smem>>
    %161 = vector.broadcast %160 : f32 to vector<1x8xf32>
    %162 = arith.mulf %159, %161 : vector<1x8xf32>
    %163 = arith.addf %140, %162 : vector<1x8xf32>
    %164 = vector.extract_strided_slice %0 {offsets = [0, 0], sizes = [1, 8], strides = [1, 1]} : vector<3x8xf32> to vector<1x8xf32>
    %c7 = arith.constant 7 : index
    %165 = memref.load %arg1[%c7] : memref<51xf32, #tpu.memory_space<smem>>
    %166 = vector.broadcast %165 : f32 to vector<1x8xf32>
    %167 = arith.mulf %164, %166 : vector<1x8xf32>
    %168 = vector.extract_strided_slice %0 {offsets = [1, 0], sizes = [1, 8], strides = [1, 1]} : vector<3x8xf32> to vector<1x8xf32>
    %c17 = arith.constant 17 : index
    %169 = memref.load %arg1[%c17] : memref<51xf32, #tpu.memory_space<smem>>
    %170 = vector.broadcast %169 : f32 to vector<1x8xf32>
    %171 = arith.mulf %168, %170 : vector<1x8xf32>
    %172 = arith.addf %167, %171 : vector<1x8xf32>
    %173 = vector.extract_strided_slice %0 {offsets = [2, 0], sizes = [1, 8], strides = [1, 1]} : vector<3x8xf32> to vector<1x8xf32>
    %c27 = arith.constant 27 : index
    %174 = memref.load %arg1[%c27] : memref<51xf32, #tpu.memory_space<smem>>
    %175 = vector.broadcast %174 : f32 to vector<1x8xf32>
    %176 = arith.mulf %173, %175 : vector<1x8xf32>
    %177 = arith.addf %172, %176 : vector<1x8xf32>
    %c37 = arith.constant 37 : index
    %178 = memref.load %arg1[%c37] : memref<51xf32, #tpu.memory_space<smem>>
    %179 = vector.broadcast %178 : f32 to vector<1x8xf32>
    %180 = arith.addf %177, %179 : vector<1x8xf32>
    %cst_8 = arith.constant 0.000000e+00 : f32
    %181 = vector.broadcast %cst_8 : f32 to vector<1x8xf32>
    %182 = arith.maximumf %180, %181 : vector<1x8xf32>
    %c47 = arith.constant 47 : index
    %183 = memref.load %arg1[%c47] : memref<51xf32, #tpu.memory_space<smem>>
    %184 = vector.broadcast %183 : f32 to vector<1x8xf32>
    %185 = arith.mulf %182, %184 : vector<1x8xf32>
    %186 = arith.addf %163, %185 : vector<1x8xf32>
    %187 = vector.extract_strided_slice %0 {offsets = [0, 0], sizes = [1, 8], strides = [1, 1]} : vector<3x8xf32> to vector<1x8xf32>
    %c8 = arith.constant 8 : index
    %188 = memref.load %arg1[%c8] : memref<51xf32, #tpu.memory_space<smem>>
    %189 = vector.broadcast %188 : f32 to vector<1x8xf32>
    %190 = arith.mulf %187, %189 : vector<1x8xf32>
    %191 = vector.extract_strided_slice %0 {offsets = [1, 0], sizes = [1, 8], strides = [1, 1]} : vector<3x8xf32> to vector<1x8xf32>
    %c18 = arith.constant 18 : index
    %192 = memref.load %arg1[%c18] : memref<51xf32, #tpu.memory_space<smem>>
    %193 = vector.broadcast %192 : f32 to vector<1x8xf32>
    %194 = arith.mulf %191, %193 : vector<1x8xf32>
    %195 = arith.addf %190, %194 : vector<1x8xf32>
    %196 = vector.extract_strided_slice %0 {offsets = [2, 0], sizes = [1, 8], strides = [1, 1]} : vector<3x8xf32> to vector<1x8xf32>
    %c28 = arith.constant 28 : index
    %197 = memref.load %arg1[%c28] : memref<51xf32, #tpu.memory_space<smem>>
    %198 = vector.broadcast %197 : f32 to vector<1x8xf32>
    %199 = arith.mulf %196, %198 : vector<1x8xf32>
    %200 = arith.addf %195, %199 : vector<1x8xf32>
    %c38 = arith.constant 38 : index
    %201 = memref.load %arg1[%c38] : memref<51xf32, #tpu.memory_space<smem>>
    %202 = vector.broadcast %201 : f32 to vector<1x8xf32>
    %203 = arith.addf %200, %202 : vector<1x8xf32>
    %cst_9 = arith.constant 0.000000e+00 : f32
    %204 = vector.broadcast %cst_9 : f32 to vector<1x8xf32>
    %205 = arith.maximumf %203, %204 : vector<1x8xf32>
    %c48 = arith.constant 48 : index
    %206 = memref.load %arg1[%c48] : memref<51xf32, #tpu.memory_space<smem>>
    %207 = vector.broadcast %206 : f32 to vector<1x8xf32>
    %208 = arith.mulf %205, %207 : vector<1x8xf32>
    %209 = arith.addf %186, %208 : vector<1x8xf32>
    %210 = vector.extract_strided_slice %0 {offsets = [0, 0], sizes = [1, 8], strides = [1, 1]} : vector<3x8xf32> to vector<1x8xf32>
    %c9 = arith.constant 9 : index
    %211 = memref.load %arg1[%c9] : memref<51xf32, #tpu.memory_space<smem>>
    %212 = vector.broadcast %211 : f32 to vector<1x8xf32>
    %213 = arith.mulf %210, %212 : vector<1x8xf32>
    %214 = vector.extract_strided_slice %0 {offsets = [1, 0], sizes = [1, 8], strides = [1, 1]} : vector<3x8xf32> to vector<1x8xf32>
    %c19 = arith.constant 19 : index
    %215 = memref.load %arg1[%c19] : memref<51xf32, #tpu.memory_space<smem>>
    %216 = vector.broadcast %215 : f32 to vector<1x8xf32>
    %217 = arith.mulf %214, %216 : vector<1x8xf32>
    %218 = arith.addf %213, %217 : vector<1x8xf32>
    %219 = vector.extract_strided_slice %0 {offsets = [2, 0], sizes = [1, 8], strides = [1, 1]} : vector<3x8xf32> to vector<1x8xf32>
    %c29 = arith.constant 29 : index
    %220 = memref.load %arg1[%c29] : memref<51xf32, #tpu.memory_space<smem>>
    %221 = vector.broadcast %220 : f32 to vector<1x8xf32>
    %222 = arith.mulf %219, %221 : vector<1x8xf32>
    %223 = arith.addf %218, %222 : vector<1x8xf32>
    %c39 = arith.constant 39 : index
    %224 = memref.load %arg1[%c39] : memref<51xf32, #tpu.memory_space<smem>>
    %225 = vector.broadcast %224 : f32 to vector<1x8xf32>
    %226 = arith.addf %223, %225 : vector<1x8xf32>
    %cst_10 = arith.constant 0.000000e+00 : f32
    %227 = vector.broadcast %cst_10 : f32 to vector<1x8xf32>
    %228 = arith.maximumf %226, %227 : vector<1x8xf32>
    %c49 = arith.constant 49 : index
    %229 = memref.load %arg1[%c49] : memref<51xf32, #tpu.memory_space<smem>>
    %230 = vector.broadcast %229 : f32 to vector<1x8xf32>
    %231 = arith.mulf %228, %230 : vector<1x8xf32>
    %232 = arith.addf %209, %231 : vector<1x8xf32>
    %c0_11 = arith.constant 0 : index
    %c0_12 = arith.constant 0 : index
    %233 = vector.load %arg3[%c0_11, %c0_12] : memref<1x8xf32, #tpu.memory_space<vmem>>, vector<1x8xf32>
    tpu.vector_store %arg3[%c0_11, %c0_12], %232 {strides = array<i32>} : memref<1x8xf32, #tpu.memory_space<vmem>>, vector<1x8xf32>,
    return
  }
  func.func @transform_0(%arg0: i32) -> i32 {
    %c0_i32 = arith.constant 0 : i32
    %c0_i32_0 = arith.constant 0 : i32
    return %c0_i32 : i32
  }
  func.func @transform_1(%arg0: i32) -> (i32, i32) {
    %c0_i32 = arith.constant 0 : i32
    %c0_i32_0 = arith.constant 0 : i32
    return %c0_i32, %arg0 : i32, i32
  }
  func.func @transform_2(%arg0: i32) -> (i32, i32) {
    %c0_i32 = arith.constant 0 : i32
    %c0_i32_0 = arith.constant 0 : i32
    return %c0_i32, %arg0 : i32, i32
  }
}

</mosaic_0001>

<bundles_post_ra>
// kernel: tpu_custom_call.1
= control target key start
LH: loop header
LB: loop body
LE: loop exit
PB: predicated region body
PF: predicated region fallthrough
CT: control target
= control target key end

     0   :  { %7 = vsyncpa [#allocation5], 0  ;;  %s562_s0 = inlined_call_operand.hbm [shape: f32[51], index: 0, kind: input, shape index: {}]   ;;  %s563_s1 = inlined_call_operand.hbm [shape: f32[3,8], index: 1, kind: input, shape index: {}]   ;;  %s564_s2 = inlined_call_operand.hbm [shape: f32[1,8], index: 2, kind: output, shape index: {}]  }
   0x1   :  { %8 = vsyncpa [#allocation3], 0 }
   0x2   :  { %9 = vsyncpa [#allocation4], 0  ;;  %s15_s11 = sshll.u32 %s562_s0, 4  ;;  %s24_s14 = sshll.u32 %s563_s1, 4  ;;  %s16_s11 = int_to_ptr.hbm [resolvable:$true] %s15_s11  ;;  %s25_s14 = int_to_ptr.hbm [resolvable:$true] %s24_s14 }
   0x3   :  { %s431_s15 = smov [#allocation2]   ;;  %s432_s16 = smov [#allocation6]  }
   0x4   :  { %18 = dma.hbm_to_smem %s16_s11, 16, %s431_s15, [#allocation5]  }
   0x5   :  { %s26_s17 = sshll.u32 %s432_s16, 4  ;;  %s27_s17 = int_to_ptr.vmem [resolvable:$true] %s26_s17 }
   0x6   :  { %29 = dma.hbm_to_vmem [thread:$0]  %s25_s14, 64, %s27_s17, [#allocation3]  }
   0x7   :  { %425 = dma.done.wait [#allocation5], 16  }
   0x8   :  { %426 = vsyncadd [#allocation5], 4294967280 }
   0x9   :  { %427 = dma.done.wait [#allocation3], 64  }
   0xa   :  { %428 = vsyncadd [#allocation3], 4294967232 }
   0xb   :  { %38 = sfence }
   0xc   :  { %s42_s18 = sld [smem:[#allocation2]]  ;;  %v459_v0 = vld [vmem:[#allocation6] sm:$0x7]  ;;  %vm292_vm0 = vcmask 57344  }
   0xd   :  { %s313_s19 = sld [smem:[#allocation2 + $0xa]] }
   0xe   :  { %s314_s0 = sld [smem:[#allocation2 + $0x14]] }
   0xf   :  { %s455_s20 = sld [smem:[#allocation2 + $0x32]] }
  0x10   :  { %s457_s21 = sld [smem:[#allocation2 + $0x1e]] }
  0x11   :  { %s317_s1 = sld [smem:[#allocation2 + $0x1]] }
  0x12   :  { %v43_v1 = vstv %s42_s18  ;;  %s318_s22 = sld [smem:[#allocation2 + $0xb]] }
  0x13   :  { %v46_v2 = vstv %s313_s19  ;;  %s319_s23 = sld [smem:[#allocation2 + $0x15]]  ;;  %v44_v3 = vmul.f32 %v43_v1, %v459_v0 }
  0x14   :  { %v47_v4 = vmul.f32 %v46_v2, %v459_v0  ;;  %v53_v5 = vstv %s314_s0  ;;  %s463_s24 = sld [smem:[#allocation2 + $0x28]] }
  0x15   :  { %v54_v6 = vmul.f32 %v53_v5, %v459_v0  ;;  %s466_s25 = sld [smem:[#allocation2 + $0x1f]]  ;;  %v41_v32 = vstv %s455_s20 }
  0x16   :  { %v49_v7 = vrot.slane %v47_v4, 1  ;;  %s322_s26 = sld [smem:[#allocation2 + $0x2]]  ;;  %v60_v12 = vstv %s457_s21 }
  0x17   :  { %v56_v8 = vrot.slane %v54_v6, 2  ;;  %v68_v9 = vstv %s317_s1  ;;  %s323_s27 = sld [smem:[#allocation2 + $0xc]] }
  0x18   :  { %v51_v10 = vadd.f32 %v49_v7, %v44_v3  ;;  %v71_v11 = vstv %s318_s22  ;;  %s324_s28 = sld [smem:[#allocation2 + $0x16]]  ;;  %v69_v13 = vmul.f32 %v68_v9, %v459_v0 }
  0x19   :  { %v72_v14 = vmul.f32 %v71_v11, %v459_v0  ;;  %v78_v15 = vstv %s319_s23  ;;  %s471_s29 = sld [smem:[#allocation2 + $0x29]] }
  0x1a   :  { %v58_v16 = vadd.f32 %v56_v8, %v51_v10  ;;  %v79_v17 = vmul.f32 %v78_v15, %v459_v0  ;;  %s474_s30 = sld [smem:[#allocation2 + $0x20]]  ;;  %v64_v22 = vstv %s463_s24 }
  0x1b   :  { %v74_v18 = vrot.slane %v72_v14, 1  ;;  %s476_s3 = sld [smem:[#allocation2 + $0x3]]  ;;  %v85_v24 = vstv %s466_s25 }
  0x1c   :  { %v61_v19 = vadd.f32 %v60_v12, %v58_v16  ;;  %v81_v20 = vrot.slane %v79_v17, 2  ;;  %v93_v21 = vstv %s322_s26  ;;  %s328_s4 = sld [smem:[#allocation2 + $0xd]] }
  0x1d   :  { %v76_v23 = vadd.f32 %v74_v18, %v69_v13  ;;  %v96_v25 = vstv %s323_s27  ;;  %s329_s5 = sld [smem:[#allocation2 + $0x17]]  ;;  %v94_v27 = vmul.f32 %v93_v21, %v459_v0 }
  0x1e   :  { %v62_v26 = vmax.f32 %v61_v19, 0.0  ;;  %v97_v28 = vmul.f32 %v96_v25, %v459_v0  ;;  %v103_v29 = vstv %s324_s28  ;;  %s482_s6 = sld [smem:[#allocation2 + $0x2a]] }
  0x1f   :  { %v83_v30 = vadd.f32 %v81_v20, %v76_v23  ;;  %v104_v31 = vmul.f32 %v103_v29, %v459_v0  ;;  %s485_s7 = sld [smem:[#allocation2 + $0x21]]  ;;  %v89_v38 = vstv %s471_s29 }
  0x20   :  { %v99_v33 = vrot.slane %v97_v28, 1  ;;  %s488_s8 = sld [smem:[#allocation2 + $0x4]]  ;;  %v65_v34 = vmul.f32 %v64_v22, %v62_v26  ;;  %v110_v40 = vstv %s474_s30 }
  0x21   :  { %v86_v35 = vadd.f32 %v85_v24, %v83_v30  ;;  %v106_v36 = vrot.slane %v104_v31, 2  ;;  %v118_v37 = vstv %s476_s3  ;;  %s333_s9 = sld [smem:[#allocation2 + $0xe]] }
  0x22   :  { %v101_v39 = vadd.f32 %v99_v33, %v94_v27  ;;  %v121_v41 = vstv %s328_s4  ;;  %s334_s10 = sld [smem:[#allocation2 + $0x18]]  ;;  %v119_v43 = vmul.f32 %v118_v37, %v459_v0  ;;  %v66_v48 = vadd.f32 %v65_v34, %v41_v32 }
  0x23   :  { %v87_v42 = vmax.f32 %v86_v35, 0.0  ;;  %v122_v44 = vmul.f32 %v121_v41, %v459_v0  ;;  %v128_v45 = vstv %s329_s5  ;;  %s495_s11 = sld [smem:[#allocation2 + $0x2b]] }
  0x24   :  { %v108_v46 = vadd.f32 %v106_v36, %v101_v39  ;;  %v129_v47 = vmul.f32 %v128_v45, %v459_v0  ;;  %s498_s12 = sld [smem:[#allocation2 + $0x22]]  ;;  %v114_v54 = vstv %s482_s6 }
  0x25   :  { %v124_v49 = vrot.slane %v122_v44, 1  ;;  %s500_s13 = sld [smem:[#allocation2 + $0x5]]  ;;  %v90_v50 = vmul.f32 %v89_v38, %v87_v42  ;;  %v135_v56 = vstv %s485_s7 }
  0x26   :  { %v111_v51 = vadd.f32 %v110_v40, %v108_v46  ;;  %v131_v52 = vrot.slane %v129_v47, 2  ;;  %v143_v53 = vstv %s488_s8  ;;  %s338_s14 = sld [smem:[#allocation2 + $0xf]] }
  0x27   :  { %v126_v55 = vadd.f32 %v124_v49, %v119_v43  ;;  %v146_v57 = vstv %s333_s9  ;;  %s339_s15 = sld [smem:[#allocation2 + $0x19]]  ;;  %v144_v59 = vmul.f32 %v143_v53, %v459_v0  ;;  %v91_v1 = vadd.f32 %v90_v50, %v66_v48  ;;  %s433_s9 = smov [#allocation7]  }
  0x28   :  { %v112_v58 = vmax.f32 %v111_v51, 0.0  ;;  %v147_v60 = vmul.f32 %v146_v57, %v459_v0  ;;  %v153_v61 = vstv %s334_s10  ;;  %s507_s16 = sld [smem:[#allocation2 + $0x2c]]  ;;  %s299_s10 = sshll.u32 %s433_s9, 4  ;;  %s300_s10 = int_to_ptr.vmem [resolvable:$true] %s299_s10 }
  0x29   :  { %v133_v62 = vadd.f32 %v131_v52, %v126_v55  ;;  %v154_v63 = vmul.f32 %v153_v61, %v459_v0  ;;  %s510_s17 = sld [smem:[#allocation2 + $0x23]]  ;;  %v139_v7 = vstv %s495_s11 }
  0x2a   :  { %v149_v2 = vrot.slane %v147_v60, 1  ;;  %s512_s18 = sld [smem:[#allocation2 + $0x6]]  ;;  %v115_v3 = vmul.f32 %v114_v54, %v112_v58  ;;  %v160_v9 = vstv %s498_s12 }
  0x2b   :  { %v136_v4 = vadd.f32 %v135_v56, %v133_v62  ;;  %v156_v5 = vrot.slane %v154_v63, 2  ;;  %v168_v6 = vstv %s500_s13  ;;  %s343_s19 = sld [smem:[#allocation2 + $0x10]]  ;;  %s301_s13 = sshll.u32 %s564_s2, 4  ;;  %s302_s13 = int_to_ptr.hbm [resolvable:$true] %s301_s13 }
  0x2c   :  { %v151_v8 = vadd.f32 %v149_v2, %v144_v59  ;;  %v171_v10 = vstv %s338_s14  ;;  %s344_s0 = sld [smem:[#allocation2 + $0x1a]]  ;;  %v169_v12 = vmul.f32 %v168_v6, %v459_v0  ;;  %v116_v17 = vadd.f32 %v115_v3, %v91_v1 }
  0x2d   :  { %v137_v11 = vmax.f32 %v136_v4, 0.0  ;;  %v172_v13 = vmul.f32 %v171_v10, %v459_v0  ;;  %v178_v14 = vstv %s339_s15  ;;  %s519_s20 = sld [smem:[#allocation2 + $0x2d]] }
  0x2e   :  { %v158_v15 = vadd.f32 %v156_v5, %v151_v8  ;;  %v179_v16 = vmul.f32 %v178_v14, %v459_v0  ;;  %s522_s21 = sld [smem:[#allocation2 + $0x24]]  ;;  %v164_v23 = vstv %s507_s16 }
  0x2f   :  { %v174_v18 = vrot.slane %v172_v13, 1  ;;  %s524_s1 = sld [smem:[#allocation2 + $0x7]]  ;;  %v140_v19 = vmul.f32 %v139_v7, %v137_v11  ;;  %v185_v25 = vstv %s510_s17 }
  0x30   :  { %v161_v20 = vadd.f32 %v160_v9, %v158_v15  ;;  %v181_v21 = vrot.slane %v179_v16, 2  ;;  %v193_v22 = vstv %s512_s18  ;;  %s348_s22 = sld [smem:[#allocation2 + $0x11]] }
  0x31   :  { %v176_v24 = vadd.f32 %v174_v18, %v169_v12  ;;  %v196_v26 = vstv %s343_s19  ;;  %s349_s23 = sld [smem:[#allocation2 + $0x1b]]  ;;  %v194_v28 = vmul.f32 %v193_v22, %v459_v0  ;;  %v141_v33 = vadd.f32 %v140_v19, %v116_v17 }
  0x32   :  { %v162_v27 = vmax.f32 %v161_v20, 0.0  ;;  %v197_v29 = vmul.f32 %v196_v26, %v459_v0  ;;  %v203_v30 = vstv %s344_s0  ;;  %s531_s24 = sld [smem:[#allocation2 + $0x2e]] }
  0x33   :  { %v183_v31 = vadd.f32 %v181_v21, %v176_v24  ;;  %v204_v32 = vmul.f32 %v203_v30, %v459_v0  ;;  %s534_s25 = sld [smem:[#allocation2 + $0x25]]  ;;  %v189_v39 = vstv %s519_s20 }
  0x34   :  { %v199_v34 = vrot.slane %v197_v29, 1  ;;  %s536_s26 = sld [smem:[#allocation2 + $0x8]]  ;;  %v165_v35 = vmul.f32 %v164_v23, %v162_v27  ;;  %v210_v41 = vstv %s522_s21 }
  0x35   :  { %v186_v36 = vadd.f32 %v185_v25, %v183_v31  ;;  %v206_v37 = vrot.slane %v204_v32, 2  ;;  %v218_v38 = vstv %s524_s1  ;;  %s353_s27 = sld [smem:[#allocation2 + $0x12]] }
  0x36   :  { %v201_v40 = vadd.f32 %v199_v34, %v194_v28  ;;  %v221_v42 = vstv %s348_s22  ;;  %s354_s28 = sld [smem:[#allocation2 + $0x1c]]  ;;  %v219_v44 = vmul.f32 %v218_v38, %v459_v0  ;;  %v166_v49 = vadd.f32 %v165_v35, %v141_v33 }
  0x37   :  { %v187_v43 = vmax.f32 %v186_v36, 0.0  ;;  %v222_v45 = vmul.f32 %v221_v42, %v459_v0  ;;  %v228_v46 = vstv %s349_s23  ;;  %s543_s29 = sld [smem:[#allocation2 + $0x2f]] }
  0x38   :  { %v208_v47 = vadd.f32 %v206_v37, %v201_v40  ;;  %v229_v48 = vmul.f32 %v228_v46, %v459_v0  ;;  %s546_s30 = sld [smem:[#allocation2 + $0x26]]  ;;  %v214_v55 = vstv %s531_s24 }
  0x39   :  { %v224_v50 = vrot.slane %v222_v45, 1  ;;  %s357_s3 = sld [smem:[#allocation2 + $0x9]]  ;;  %v190_v51 = vmul.f32 %v189_v39, %v187_v43  ;;  %v235_v57 = vstv %s534_s25 }
  0x3a   :  { %v211_v52 = vadd.f32 %v210_v41, %v208_v47  ;;  %v231_v53 = vrot.slane %v229_v48, 2  ;;  %v243_v54 = vstv %s536_s26  ;;  %s358_s4 = sld [smem:[#allocation2 + $0x13]] }
  0x3b   :  { %v226_v56 = vadd.f32 %v224_v50, %v219_v44  ;;  %v246_v58 = vstv %s353_s27  ;;  %s359_s5 = sld [smem:[#allocation2 + $0x1d]]  ;;  %v244_v60 = vmul.f32 %v243_v54, %v459_v0  ;;  %v191_v2 = vadd.f32 %v190_v51, %v166_v49 }
  0x3c   :  { %v212_v59 = vmax.f32 %v211_v52, 0.0  ;;  %v247_v61 = vmul.f32 %v246_v58, %v459_v0  ;;  %v253_v62 = vstv %s354_s28  ;;  %s356_s6 = sld [smem:[#allocation2 + $0x30]] }
  0x3d   :  { %v233_v63 = vadd.f32 %v231_v53, %v226_v56  ;;  %v254_v1 = vmul.f32 %v253_v62, %v459_v0  ;;  %s360_s7 = sld [smem:[#allocation2 + $0x27]]  ;;  %v239_v8 = vstv %s543_s29 }
  0x3e   :  { %v249_v3 = vrot.slane %v247_v61, 1  ;;  %v215_v4 = vmul.f32 %v214_v55, %v212_v59  ;;  %v260_v10 = vstv %s546_s30  ;;  %s361_s8 = sld [smem:[#allocation2 + $0x31]] }
  0x3f   :  { %v236_v5 = vadd.f32 %v235_v57, %v233_v63  ;;  %v256_v6 = vrot.slane %v254_v1, 2  ;;  %v268_v7 = vstv %s357_s3 }
  0x40   :  { %v251_v9 = vadd.f32 %v249_v3, %v244_v60  ;;  %v271_v11 = vstv %s358_s4  ;;  %v269_v13 = vmul.f32 %v268_v7, %v459_v0  ;;  %v216_v18 = vadd.f32 %v215_v4, %v191_v2 }
  0x41   :  { %v237_v12 = vmax.f32 %v236_v5, 0.0  ;;  %v272_v14 = vmul.f32 %v271_v11, %v459_v0  ;;  %v278_v15 = vstv %s359_s5 }
  0x42   :  { %v258_v16 = vadd.f32 %v256_v6, %v251_v9  ;;  %v279_v17 = vmul.f32 %v278_v15, %v459_v0  ;;  %v264_v23 = vstv %s356_s6 }
  0x43   :  { %v240_v19 = vmul.f32 %v239_v8, %v237_v12  ;;  %v274_v20 = vrot.slane %v272_v14, 1  ;;  %v285_v26 = vstv %s360_s7 }
  0x44   :  { %v261_v21 = vadd.f32 %v260_v10, %v258_v16  ;;  %v281_v22 = vrot.slane %v279_v17, 2  ;;  %v289_v31 = vstv %s361_s8 }
  0x45   :  { %v276_v24 = vadd.f32 %v274_v20, %v269_v13  ;;  %v241_v27 = vadd.f32 %v240_v19, %v216_v18 }
  0x46   :  { %v262_v25 = vmax.f32 %v261_v21, 0.0 }
  0x47   :  { %v283_v28 = vadd.f32 %v281_v22, %v276_v24 }
  0x48   :  { %v265_v29 = vmul.f32 %v264_v23, %v262_v25 }
  0x49   :  { %v286_v30 = vadd.f32 %v285_v26, %v283_v28 }
  0x4a   :  { %v266_v32 = vadd.f32 %v265_v29, %v241_v27 }
  0x4b   :  { %v287_v33 = vmax.f32 %v286_v30, 0.0 }
  0x4d   :  { %v290_v0 = vmul.f32 %v289_v31, %v287_v33 }
  0x4f   :  { %v291_v34 = vadd.f32 %v290_v0, %v266_v32 }
  0x51   :  { %293 = vst.msk [vmem:[#allocation7] sm:$0x1] %vm292_vm0, %v291_v34 }
  0x52   :  { %304 = dma.vmem_to_hbm [thread:$0]  %s300_s10, 16, %s302_s13, [#allocation4]  }
  0x53   :  { %429 = dma.done.wait [#allocation4], 16  }
  0x54   :  { %430 = vsyncadd [#allocation4], 4294967280 }
  0x55   :  { %309 = vsyncpa [#allocation3], 1 }
  0x56   :  { %310 = vsyncpa [#allocation4], 1 }
  0x57   :  { %311 = vsyncpa [#allocation5], 1 }

</bundles_post_ra>
